<compile_context>
chip_gen: v7x
topology: tpu7x:2x2x1
jax: 0.10.0
libtpu: 0.0.40
codegen_flags: <defaults>
</compile_context>

<pallas_src>
import jax
import jax.numpy as jnp
from jax.experimental import pallas as pl
from jax.experimental.pallas import tpu as pltpu

LN_EPS = 1e-5                       # torch.nn.LayerNorm default
_INV_SQRT2 = 0.7071067811865475
_VMEM_LIMIT = 48 * 1024 * 1024      # explicit scoped-VMEM limit
_FUSED_VMEM_BUDGET = 36 * 1024 * 1024


def _gelu(x):
    # exact erf GELU (matches nn.GELU() default)
    return 0.5 * x * (1.0 + jax.lax.erf(x * _INV_SQRT2))


def _layernorm_rows(x, g, b):
    """LayerNorm over the last (lane) axis.  g/b broadcast as (1, dim)."""
    mu = jnp.mean(x, axis=-1, keepdims=True)
    var = jnp.mean((x - mu) ** 2, axis=-1, keepdims=True)   # biased, like torch
    return (x - mu) * jax.lax.rsqrt(var + LN_EPS) * g + b


def _layernorm_cols(x, g, b):
    """LayerNorm over the first (sublane) axis.  g/b broadcast as (dim, 1)."""
    mu = jnp.mean(x, axis=0, keepdims=True)
    var = jnp.mean((x - mu) ** 2, axis=0, keepdims=True)
    return (x - mu) * jax.lax.rsqrt(var + LN_EPS) * g + b


def _round_up(x, m):
    return (x + m - 1) // m * m


# ----------------------------------------------------------------------------
# Parameter packing (2 slabs per BasicFF block instead of 10 tiny vectors)
# ----------------------------------------------------------------------------
def _pack_row_params(p):
    """BasicFF applied along the LANE axis (ff1): row-broadcast vectors."""
    vd = jnp.stack([p["ln0_g"], p["ln0_b"], p["ln1_g"], p["ln1_b"], p["b2"]], 0)
    vh = jnp.stack([p["b1"], p["ln2_g"], p["ln2_b"]], 0)
    return vd, vh, p["w1"].astype(jnp.bfloat16), p["w2"].astype(jnp.bfloat16)


def _pack_col_params(p):
    """BasicFF applied along the SUBLANE axis (ff2): column-broadcast vectors,
    weights pre-transposed so the matmuls are left-multiplies (no activation
    transpose)."""
    vn = jnp.stack([p["ln0_g"], p["ln0_b"], p["ln1_g"], p["ln1_b"], p["b2"]], 1)
    vm = jnp.stack([p["b1"], p["ln2_g"], p["ln2_b"]], 1)
    w1t = jnp.transpose(p["w1"]).astype(jnp.bfloat16)
    w2t = jnp.transpose(p["w2"]).astype(jnp.bfloat16)
    return vn, vm, w1t, w2t


# ----------------------------------------------------------------------------
# In-kernel BasicFF stages
# ----------------------------------------------------------------------------
def _basicff_rows(x, vd, vh, w1, w2):
    """y = LN0(x); BasicFF over the lane axis; returns GELU(net2(net1(y)) + y)."""
    ln0g, ln0b = vd[0:1], vd[1:2]
    ln1g, ln1b = vd[2:3], vd[3:4]
    b2 = vd[4:5]
    b1, ln2g, ln2b = vh[0:1], vh[1:2], vh[2:3]

    y = _layernorm_rows(x, ln0g, ln0b)
    t = _layernorm_rows(y, ln1g, ln1b)
    h = _gelu(jnp.dot(t.astype(jnp.bfloat16), w1,
                      preferred_element_type=jnp.float32) + b1)
    u = _layernorm_rows(h, ln2g, ln2b)
    z = jnp.dot(u.astype(jnp.bfloat16), w2,
                preferred_element_type=jnp.float32) + b2
    return _gelu(z + y)


def _basicff_cols(a, vn, vm, w1t, w2t):
    """Same, but the normalized/contracted axis is the SUBLANE axis; linears are
    left-multiplies with pre-transposed weights so D stays the lane axis."""
    n0g, n0b = vn[:, 0:1], vn[:, 1:2]
    n1g, n1b = vn[:, 2:3], vn[:, 3:4]
    c2 = vn[:, 4:5]
    c1, n2g, n2b = vm[:, 0:1], vm[:, 1:2], vm[:, 2:3]

    y = _layernorm_cols(a, n0g, n0b)
    t = _layernorm_cols(y, n1g, n1b)
    h = _gelu(jnp.dot(w1t, t.astype(jnp.bfloat16),
                      preferred_element_type=jnp.float32) + c1)
    u = _layernorm_cols(h, n2g, n2b)
    z = jnp.dot(w2t, u.astype(jnp.bfloat16),
                preferred_element_type=jnp.float32) + c2
    return _gelu(z + y)


# ----------------------------------------------------------------------------
# Fused single-pass kernel: per batch slab (N, D), ff1 + ff2 + final residual
# ----------------------------------------------------------------------------
def _fused_kernel(x_ref, vd_ref, vh_ref, w1_ref, w2_ref,
                  vn_ref, vm_ref, w1t_ref, w2t_ref, o_ref):
    x = x_ref[0]                                                  # (N, D) f32
    a = _basicff_rows(x, vd_ref[...], vh_ref[...], w1_ref[...], w2_ref[...])
    o = _basicff_cols(a, vn_ref[...], vm_ref[...], w1t_ref[...], w2t_ref[...])
    o_ref[0] = _gelu(o + x)                                       # final residual


def cms_encoder_fused(x, params):
    B, N, D = x.shape
    p1, p2 = params["ff1"], params["ff2"]
    H1 = p1["w1"].shape[1]      # 2 * D
    H2 = p2["w1"].shape[1]      # 2 * N
    vd, vh, w1, w2 = _pack_row_params(p1)
    vn, vm, w1t, w2t = _pack_col_params(p2)

    return pl.pallas_call(
        _fused_kernel,
        out_shape=jax.ShapeDtypeStruct((B, N, D), jnp.float32),
        grid_spec=pltpu.PrefetchScalarGridSpec(
            num_scalar_prefetch=0,
            grid=(B,),
            in_specs=[
                pl.BlockSpec((1, N, D), lambda b: (b, 0, 0)),   # x slab
                pl.BlockSpec((5, D), lambda b: (0, 0)),         # ff1 D-vectors
                pl.BlockSpec((3, H1), lambda b: (0, 0)),        # ff1 H-vectors
                pl.BlockSpec((D, H1), lambda b: (0, 0)),        # ff1 W1 (bf16)
                pl.BlockSpec((H1, D), lambda b: (0, 0)),        # ff1 W2 (bf16)
                pl.BlockSpec((N, 5), lambda b: (0, 0)),         # ff2 N-vectors
                pl.BlockSpec((H2, 3), lambda b: (0, 0)),        # ff2 2N-vectors
                pl.BlockSpec((H2, N), lambda b: (0, 0)),        # ff2 W1^T (bf16)
                pl.BlockSpec((N, H2), lambda b: (0, 0)),        # ff2 W2^T (bf16)
            ],
            out_specs=pl.BlockSpec((1, N, D), lambda b: (b, 0, 0)),
        ),
        compiler_params=pltpu.CompilerParams(
            dimension_semantics=("parallel",),
            vmem_limit_bytes=_VMEM_LIMIT),
    )(x, vd, vh, w1, w2, vn, vm, w1t, w2t)


# ----------------------------------------------------------------------------
# Fallback path (large D): row-tiled ff1 kernel + per-(batch, D-tile) ff2 kernel
# with the final residual GELU fused into its epilogue.
# ----------------------------------------------------------------------------
def _pick_row_tile(R, max_tile=256):
    """Row tile: multiple of 8, <= max_tile, >=2 grid steps when R allows."""
    t = min(max_tile, _round_up(R, 8))
    if R > 8 and -(-R // t) < 2:
        t = max(8, _round_up(-(-R // 2), 8))
    return t


def _pick_col_tile(D, max_tile=512):
    """Lane tile for the ff2 D axis: full D if small, else a multiple of 128."""
    if D <= max_tile:
        return D, D
    Dp = _round_up(D, 128)
    t = max_tile
    while Dp % t:
        t -= 128
    return t, Dp


def _ff1_kernel(x_ref, vd_ref, vh_ref, w1_ref, w2_ref, o_ref):
    o_ref[...] = _basicff_rows(x_ref[...], vd_ref[...], vh_ref[...],
                               w1_ref[...], w2_ref[...])


def cms_ff1(x2d, p):
    """x2d: (R, D) f32.  Returns (R, D) f32."""
    R, D = x2d.shape
    H = p["w1"].shape[1]
    tile_r = _pick_row_tile(R)
    Rp = _round_up(R, tile_r)
    xp = x2d if Rp == R else jnp.pad(x2d, ((0, Rp - R), (0, 0)))
    vd, vh, w1, w2 = _pack_row_params(p)

    out = pl.pallas_call(
        _ff1_kernel,
        out_shape=jax.ShapeDtypeStruct((Rp, D), jnp.float32),
        grid_spec=pltpu.PrefetchScalarGridSpec(
            num_scalar_prefetch=0,
            grid=(Rp // tile_r,),
            in_specs=[
                pl.BlockSpec((tile_r, D), lambda i: (i, 0)),
                pl.BlockSpec((5, D), lambda i: (0, 0)),
                pl.BlockSpec((3, H), lambda i: (0, 0)),
                pl.BlockSpec((D, H), lambda i: (0, 0)),
                pl.BlockSpec((H, D), lambda i: (0, 0)),
            ],
            out_specs=pl.BlockSpec((tile_r, D), lambda i: (i, 0)),
        ),
        compiler_params=pltpu.CompilerParams(
            dimension_semantics=("parallel",),
            vmem_limit_bytes=_VMEM_LIMIT),
    )(xp, vd, vh, w1, w2)
    return out if Rp == R else out[:R]


def _ff2_kernel(a_ref, x_ref, vn_ref, vm_ref, w1t_ref, w2t_ref, o_ref):
    o = _basicff_cols(a_ref[0], vn_ref[...], vm_ref[...],
                      w1t_ref[...], w2t_ref[...])
    o_ref[0] = _gelu(o + x_ref[0])     # fused CMSEncoder residual with original x


def cms_ff2_residual(out1, x, p):
    """out1, x: (B, N, D) f32.  Returns GELU(ff2(out1) + x), shape (B, N, D)."""
    B, N, D = out1.shape
    H = p["w1"].shape[1]               # 2 * N
    tile_d, Dp = _pick_col_tile(D)
    if Dp != D:
        out1 = jnp.pad(out1, ((0, 0), (0, 0), (0, Dp - D)))
        x = jnp.pad(x, ((0, 0), (0, 0), (0, Dp - D)))
    vn, vm, w1t, w2t = _pack_col_params(p)

    out = pl.pallas_call(
        _ff2_kernel,
        out_shape=jax.ShapeDtypeStruct((B, N, Dp), jnp.float32),
        grid_spec=pltpu.PrefetchScalarGridSpec(
            num_scalar_prefetch=0,
            grid=(B, Dp // tile_d),
            in_specs=[
                pl.BlockSpec((1, N, tile_d), lambda b, j: (b, 0, j)),  # ff1 out
                pl.BlockSpec((1, N, tile_d), lambda b, j: (b, 0, j)),  # orig x
                pl.BlockSpec((N, 5), lambda b, j: (0, 0)),
                pl.BlockSpec((H, 3), lambda b, j: (0, 0)),
                pl.BlockSpec((H, N), lambda b, j: (0, 0)),
                pl.BlockSpec((N, H), lambda b, j: (0, 0)),
            ],
            out_specs=pl.BlockSpec((1, N, tile_d), lambda b, j: (b, 0, j)),
        ),
        compiler_params=pltpu.CompilerParams(
            dimension_semantics=("parallel", "parallel"),
            vmem_limit_bytes=_VMEM_LIMIT),
    )(out1, x, vn, vm, w1t, w2t)
    return out if Dp == D else out[:, :, :D]


# ----------------------------------------------------------------------------
# Dispatch: fused single pass when the working set fits VMEM, else tiled path.
# ----------------------------------------------------------------------------
def _fused_vmem_bytes(N, D, H1, H2):
    # double-buffered activation blocks + (conservatively double-counted)
    # weight / vector slabs + rough in-kernel f32 temporaries.
    act = 2 * 2 * N * max(D, 128) * 4
    w_ff1 = 2 * (D * H1 + H1 * D) * 2
    w_ff2 = 2 * (H2 * N + N * H2) * 2
    vecs = 2 * (5 * D + 3 * H1 + 5 * N + 3 * H2) * 4 + 4096
    temps = (10 * N * max(D, 128) + 6 * N * max(H1, 128)
             + 6 * max(H2, 8) * max(D, 128)) * 4
    return act + w_ff1 + w_ff2 + vecs + temps


def cms_encoder(x, params):
    """CMSEncoder forward (inference mode; dropout = identity)."""
    B, N, D = x.shape
    H1 = params["ff1"]["w1"].shape[1]
    H2 = params["ff2"]["w1"].shape[1]
    if _fused_vmem_bytes(N, D, H1, H2) <= _FUSED_VMEM_BUDGET:
        return cms_encoder_fused(x, params)
    # Large-D fallback: row-tiled ff1, then ff2 + final residual GELU fused.
    out1 = cms_ff1(x.reshape(B * N, D), params["ff1"]).reshape(B, N, D)
    return cms_ff2_residual(out1, x, params["ff2"])


# ----------------------------------------------------------------------------
# deterministic parameter construction + pure-JAX (f32, erf-GELU) reference
# ----------------------------------------------------------------------------
def make_block_params(key, dim):
    hidden = 2 * dim
    ks = jax.random.split(key, 10)
    s = 0.05
    return {
        "ln0_g": 1.0 + s * jax.random.normal(ks[0], (dim,), jnp.float32),
        "ln0_b": s * jax.random.normal(ks[1], (dim,), jnp.float32),
        "ln1_g": 1.0 + s * jax.random.normal(ks[2], (dim,), jnp.float32),
        "ln1_b": s * jax.random.normal(ks[3], (dim,), jnp.float32),
        "w1": s * jax.random.normal(ks[4], (dim, hidden), jnp.float32),
        "b1": s * jax.random.normal(ks[5], (hidden,), jnp.float32),
        "ln2_g": 1.0 + s * jax.random.normal(ks[6], (hidden,), jnp.float32),
        "ln2_b": s * jax.random.normal(ks[7], (hidden,), jnp.float32),
        "w2": s * jax.random.normal(ks[8], (hidden, dim), jnp.float32),
        "b2": s * jax.random.normal(ks[9], (dim,), jnp.float32),
    }


def _ref_block(x2d, p):
    y = _layernorm_rows(x2d, p["ln0_g"], p["ln0_b"])
    t = _layernorm_rows(y, p["ln1_g"], p["ln1_b"])
    h = jax.nn.gelu(t @ p["w1"] + p["b1"], approximate=False)
    u = _layernorm_rows(h, p["ln2_g"], p["ln2_b"])
    z = u @ p["w2"] + p["b2"]
    return jax.nn.gelu(z + y, approximate=False)


def ref_cms_encoder(x, params):
    B, N, D = x.shape
    o1 = _ref_block(x.reshape(B * N, D), params["ff1"]).reshape(B, N, D)
    o1t = jnp.transpose(o1, (0, 2, 1)).reshape(B * D, N)
    o2 = jnp.transpose(_ref_block(o1t, params["ff2"]).reshape(B, D, N), (0, 2, 1))
    return jax.nn.gelu(o2 + x, approximate=False)


if __name__ == "__main__":
    B, N, D = 2, 8, 32          # batch=2, vec_n=8, vec_dim=32
    key = jax.random.PRNGKey(0)
    kx, k1, k2 = jax.random.split(key, 3)
    x = jax.random.normal(kx, (B, N, D), jnp.float32)
    params = {
        "ff1": make_block_params(k1, D),   # BasicFF over vec_dim (hidden = 2*D)
        "ff2": make_block_params(k2, N),   # BasicFF over vec_n   (hidden = 2*N)
    }

    out = jax.block_until_ready(jax.jit(cms_encoder)(x, params))
    ref = jax.block_until_ready(ref_cms_encoder(x, params))
    assert out.shape == (B, N, D)
    err = float(jnp.max(jnp.abs(out - ref)))
    # Kernel uses bf16 MXU operands (f32 accumulation); reference is all-f32,
    # so the tolerance is relaxed accordingly.
    assert err < 5e-2, err
    print("KERNEL_OK")
</pallas_src>

<mosaic_0001>
module attributes {stable_mosaic.version = 11 : i64} {
  func.func @_fused_kernel(%arg0: i32, %arg1: memref<1x8x32xf32, #tpu.memory_space<vmem>>, %arg2: memref<5x32xf32, #tpu.memory_space<vmem>>, %arg3: memref<3x64xf32, #tpu.memory_space<vmem>>, %arg4: memref<32x64xbf16, #tpu.memory_space<vmem>>, %arg5: memref<64x32xbf16, #tpu.memory_space<vmem>>, %arg6: memref<8x5xf32, #tpu.memory_space<vmem>>, %arg7: memref<16x3xf32, #tpu.memory_space<vmem>>, %arg8: memref<16x8xbf16, #tpu.memory_space<vmem>>, %arg9: memref<8x16xbf16, #tpu.memory_space<vmem>>, %arg10: memref<1x8x32xf32, #tpu.memory_space<vmem>>) attributes {dimension_semantics = [#tpu.dimension_semantics<parallel>], iteration_bounds = array<i64: 2>, scalar_prefetch = 0 : i64, scratch_operands = 0 : i64, tpu.core_type = #tpu.core_type<tc>, window_params = [{transform_indices = @transform_0, window_bounds = array<i64: 1, 8, 32>}, {pipeline_mode = #tpu.pipeline_mode<synchronous>, transform_indices = @transform_1, window_bounds = array<i64: 5, 32>}, {pipeline_mode = #tpu.pipeline_mode<synchronous>, transform_indices = @transform_2, window_bounds = array<i64: 3, 64>}, {pipeline_mode = #tpu.pipeline_mode<synchronous>, transform_indices = @transform_3, window_bounds = array<i64: 32, 64>}, {pipeline_mode = #tpu.pipeline_mode<synchronous>, transform_indices = @transform_4, window_bounds = array<i64: 64, 32>}, {pipeline_mode = #tpu.pipeline_mode<synchronous>, transform_indices = @transform_5, window_bounds = array<i64: 8, 5>}, {pipeline_mode = #tpu.pipeline_mode<synchronous>, transform_indices = @transform_6, window_bounds = array<i64: 16, 3>}, {pipeline_mode = #tpu.pipeline_mode<synchronous>, transform_indices = @transform_7, window_bounds = array<i64: 16, 8>}, {pipeline_mode = #tpu.pipeline_mode<synchronous>, transform_indices = @transform_8, window_bounds = array<i64: 8, 16>}, {transform_indices = @transform_9, window_bounds = array<i64: 1, 8, 32>}]} {
    %c0 = arith.constant 0 : index
    %c0_0 = arith.constant 0 : index
    %c0_1 = arith.constant 0 : index
    %0 = vector.load %arg1[%c0, %c0_0, %c0_1] : memref<1x8x32xf32, #tpu.memory_space<vmem>>, vector<1x8x32xf32>
    %1 = vector.shape_cast %0 : vector<1x8x32xf32> to vector<8x32xf32>
    %c0_2 = arith.constant 0 : index
    %c0_3 = arith.constant 0 : index
    %2 = vector.load %arg2[%c0_2, %c0_3] : memref<5x32xf32, #tpu.memory_space<vmem>>, vector<5x32xf32>
    %c0_4 = arith.constant 0 : index
    %c0_5 = arith.constant 0 : index
    %3 = vector.load %arg3[%c0_4, %c0_5] : memref<3x64xf32, #tpu.memory_space<vmem>>, vector<3x64xf32>
    %c0_6 = arith.constant 0 : index
    %c0_7 = arith.constant 0 : index
    %4 = vector.load %arg4[%c0_6, %c0_7] : memref<32x64xbf16, #tpu.memory_space<vmem>>, vector<32x64xbf16>
    %c0_8 = arith.constant 0 : index
    %c0_9 = arith.constant 0 : index
    %5 = vector.load %arg5[%c0_8, %c0_9] : memref<64x32xbf16, #tpu.memory_space<vmem>>, vector<64x32xbf16>
    %6 = vector.extract_strided_slice %2 {offsets = [0, 0], sizes = [1, 32], strides = [1, 1]} : vector<5x32xf32> to vector<1x32xf32>
    %7 = vector.extract_strided_slice %2 {offsets = [1, 0], sizes = [1, 32], strides = [1, 1]} : vector<5x32xf32> to vector<1x32xf32>
    %8 = vector.extract_strided_slice %2 {offsets = [2, 0], sizes = [1, 32], strides = [1, 1]} : vector<5x32xf32> to vector<1x32xf32>
    %9 = vector.extract_strided_slice %2 {offsets = [3, 0], sizes = [1, 32], strides = [1, 1]} : vector<5x32xf32> to vector<1x32xf32>
    %10 = vector.extract_strided_slice %2 {offsets = [4, 0], sizes = [1, 32], strides = [1, 1]} : vector<5x32xf32> to vector<1x32xf32>
    %11 = vector.extract_strided_slice %3 {offsets = [0, 0], sizes = [1, 64], strides = [1, 1]} : vector<3x64xf32> to vector<1x64xf32>
    %12 = vector.extract_strided_slice %3 {offsets = [1, 0], sizes = [1, 64], strides = [1, 1]} : vector<3x64xf32> to vector<1x64xf32>
    %13 = vector.extract_strided_slice %3 {offsets = [2, 0], sizes = [1, 64], strides = [1, 1]} : vector<3x64xf32> to vector<1x64xf32>
    %cst = arith.constant dense<0.000000e+00> : vector<8xf32>
    %14 = vector.multi_reduction <add>, %1, %cst [1] : vector<8x32xf32> to vector<8xf32>
    %15 = vector.shape_cast %14 : vector<8xf32> to vector<8x1xf32>
    %cst_10 = arith.constant 3.200000e+01 : f32
    %16 = vector.broadcast %cst_10 : f32 to vector<8x1xf32>
    %17 = arith.divf %15, %16 : vector<8x1xf32>
    %18 = vector.broadcast %17 : vector<8x1xf32> to vector<8x32xf32>
    %19 = arith.subf %1, %18 : vector<8x32xf32>
    %20 = arith.mulf %19, %19 : vector<8x32xf32>
    %cst_11 = arith.constant dense<0.000000e+00> : vector<8xf32>
    %21 = vector.multi_reduction <add>, %20, %cst_11 [1] : vector<8x32xf32> to vector<8xf32>
    %22 = vector.shape_cast %21 : vector<8xf32> to vector<8x1xf32>
    %cst_12 = arith.constant 3.200000e+01 : f32
    %23 = vector.broadcast %cst_12 : f32 to vector<8x1xf32>
    %24 = arith.divf %22, %23 : vector<8x1xf32>
    %25 = vector.broadcast %17 : vector<8x1xf32> to vector<8x32xf32>
    %26 = arith.subf %1, %25 : vector<8x32xf32>
    %cst_13 = arith.constant 9.99999974E-6 : f32
    %27 = vector.broadcast %cst_13 : f32 to vector<8x1xf32>
    %28 = arith.addf %24, %27 : vector<8x1xf32>
    %29 = math.rsqrt %28 : vector<8x1xf32>
    %30 = vector.broadcast %29 : vector<8x1xf32> to vector<8x32xf32>
    %31 = arith.mulf %26, %30 : vector<8x32xf32>
    %32 = vector.broadcast %6 : vector<1x32xf32> to vector<8x32xf32>
    %33 = arith.mulf %31, %32 : vector<8x32xf32>
    %34 = vector.broadcast %7 : vector<1x32xf32> to vector<8x32xf32>
    %35 = arith.addf %33, %34 : vector<8x32xf32>
    %cst_14 = arith.constant dense<0.000000e+00> : vector<8xf32>
    %36 = vector.multi_reduction <add>, %35, %cst_14 [1] : vector<8x32xf32> to vector<8xf32>
    %37 = vector.shape_cast %36 : vector<8xf32> to vector<8x1xf32>
    %cst_15 = arith.constant 3.200000e+01 : f32
    %38 = vector.broadcast %cst_15 : f32 to vector<8x1xf32>
    %39 = arith.divf %37, %38 : vector<8x1xf32>
    %40 = vector.broadcast %39 : vector<8x1xf32> to vector<8x32xf32>
    %41 = arith.subf %35, %40 : vector<8x32xf32>
    %42 = arith.mulf %41, %41 : vector<8x32xf32>
    %cst_16 = arith.constant dense<0.000000e+00> : vector<8xf32>
    %43 = vector.multi_reduction <add>, %42, %cst_16 [1] : vector<8x32xf32> to vector<8xf32>
    %44 = vector.shape_cast %43 : vector<8xf32> to vector<8x1xf32>
    %cst_17 = arith.constant 3.200000e+01 : f32
    %45 = vector.broadcast %cst_17 : f32 to vector<8x1xf32>
    %46 = arith.divf %44, %45 : vector<8x1xf32>
    %47 = vector.broadcast %39 : vector<8x1xf32> to vector<8x32xf32>
    %48 = arith.subf %35, %47 : vector<8x32xf32>
    %cst_18 = arith.constant 9.99999974E-6 : f32
    %49 = vector.broadcast %cst_18 : f32 to vector<8x1xf32>
    %50 = arith.addf %46, %49 : vector<8x1xf32>
    %51 = math.rsqrt %50 : vector<8x1xf32>
    %52 = vector.broadcast %51 : vector<8x1xf32> to vector<8x32xf32>
    %53 = arith.mulf %48, %52 : vector<8x32xf32>
    %54 = vector.broadcast %8 : vector<1x32xf32> to vector<8x32xf32>
    %55 = arith.mulf %53, %54 : vector<8x32xf32>
    %56 = vector.broadcast %9 : vector<1x32xf32> to vector<8x32xf32>
    %57 = arith.addf %55, %56 : vector<8x32xf32>
    %58 = arith.truncf %57 : vector<8x32xf32> to vector<8x32xbf16>
    %cst_19 = arith.constant dense<0.000000e+00> : vector<8x64xf32>
    %59 = tpu.matmul %58, %4, %cst_19 {dimension_numbers = #tpu.dot_dimension_numbers<[1], [0], [0], [1], [0, 0, 1, 1], [], []>} : vector<8x32xbf16>, vector<32x64xbf16>, vector<8x64xf32> -> vector<8x64xf32>
    %60 = vector.broadcast %11 : vector<1x64xf32> to vector<8x64xf32>
    %61 = arith.addf %59, %60 : vector<8x64xf32>
    %cst_20 = arith.constant 5.000000e-01 : f32
    %62 = vector.broadcast %cst_20 : f32 to vector<8x64xf32>
    %63 = arith.mulf %62, %61 : vector<8x64xf32>
    %cst_21 = arith.constant 0.707106769 : f32
    %64 = vector.broadcast %cst_21 : f32 to vector<8x64xf32>
    %65 = arith.mulf %61, %64 : vector<8x64xf32>
    %66 = math.erf %65 : vector<8x64xf32>
    %cst_22 = arith.constant 1.000000e+00 : f32
    %67 = vector.broadcast %cst_22 : f32 to vector<8x64xf32>
    %68 = arith.addf %67, %66 : vector<8x64xf32>
    %69 = arith.mulf %63, %68 : vector<8x64xf32>
    %cst_23 = arith.constant dense<0.000000e+00> : vector<8xf32>
    %70 = vector.multi_reduction <add>, %69, %cst_23 [1] : vector<8x64xf32> to vector<8xf32>
    %71 = vector.shape_cast %70 : vector<8xf32> to vector<8x1xf32>
    %cst_24 = arith.constant 6.400000e+01 : f32
    %72 = vector.broadcast %cst_24 : f32 to vector<8x1xf32>
    %73 = arith.divf %71, %72 : vector<8x1xf32>
    %74 = vector.broadcast %73 : vector<8x1xf32> to vector<8x64xf32>
    %75 = arith.subf %69, %74 : vector<8x64xf32>
    %76 = arith.mulf %75, %75 : vector<8x64xf32>
    %cst_25 = arith.constant dense<0.000000e+00> : vector<8xf32>
    %77 = vector.multi_reduction <add>, %76, %cst_25 [1] : vector<8x64xf32> to vector<8xf32>
    %78 = vector.shape_cast %77 : vector<8xf32> to vector<8x1xf32>
    %cst_26 = arith.constant 6.400000e+01 : f32
    %79 = vector.broadcast %cst_26 : f32 to vector<8x1xf32>
    %80 = arith.divf %78, %79 : vector<8x1xf32>
    %81 = vector.broadcast %73 : vector<8x1xf32> to vector<8x64xf32>
    %82 = arith.subf %69, %81 : vector<8x64xf32>
    %cst_27 = arith.constant 9.99999974E-6 : f32
    %83 = vector.broadcast %cst_27 : f32 to vector<8x1xf32>
    %84 = arith.addf %80, %83 : vector<8x1xf32>
    %85 = math.rsqrt %84 : vector<8x1xf32>
    %86 = vector.broadcast %85 : vector<8x1xf32> to vector<8x64xf32>
    %87 = arith.mulf %82, %86 : vector<8x64xf32>
    %88 = vector.broadcast %12 : vector<1x64xf32> to vector<8x64xf32>
    %89 = arith.mulf %87, %88 : vector<8x64xf32>
    %90 = vector.broadcast %13 : vector<1x64xf32> to vector<8x64xf32>
    %91 = arith.addf %89, %90 : vector<8x64xf32>
    %92 = arith.truncf %91 : vector<8x64xf32> to vector<8x64xbf16>
    %cst_28 = arith.constant dense<0.000000e+00> : vector<8x32xf32>
    %93 = tpu.matmul %92, %5, %cst_28 {dimension_numbers = #tpu.dot_dimension_numbers<[1], [0], [0], [1], [0, 0, 1, 1], [], []>} : vector<8x64xbf16>, vector<64x32xbf16>, vector<8x32xf32> -> vector<8x32xf32>
    %94 = vector.broadcast %10 : vector<1x32xf32> to vector<8x32xf32>
    %95 = arith.addf %93, %94 : vector<8x32xf32>
    %96 = arith.addf %95, %35 : vector<8x32xf32>
    %cst_29 = arith.constant 5.000000e-01 : f32
    %97 = vector.broadcast %cst_29 : f32 to vector<8x32xf32>
    %98 = arith.mulf %97, %96 : vector<8x32xf32>
    %cst_30 = arith.constant 0.707106769 : f32
    %99 = vector.broadcast %cst_30 : f32 to vector<8x32xf32>
    %100 = arith.mulf %96, %99 : vector<8x32xf32>
    %101 = math.erf %100 : vector<8x32xf32>
    %cst_31 = arith.constant 1.000000e+00 : f32
    %102 = vector.broadcast %cst_31 : f32 to vector<8x32xf32>
    %103 = arith.addf %102, %101 : vector<8x32xf32>
    %104 = arith.mulf %98, %103 : vector<8x32xf32>
    %c0_32 = arith.constant 0 : index
    %c0_33 = arith.constant 0 : index
    %105 = vector.load %arg6[%c0_32, %c0_33] : memref<8x5xf32, #tpu.memory_space<vmem>>, vector<8x5xf32>
    %c0_34 = arith.constant 0 : index
    %c0_35 = arith.constant 0 : index
    %106 = vector.load %arg7[%c0_34, %c0_35] : memref<16x3xf32, #tpu.memory_space<vmem>>, vector<16x3xf32>
    %c0_36 = arith.constant 0 : index
    %c0_37 = arith.constant 0 : index
    %107 = vector.load %arg8[%c0_36, %c0_37] : memref<16x8xbf16, #tpu.memory_space<vmem>>, vector<16x8xbf16>
    %c0_38 = arith.constant 0 : index
    %c0_39 = arith.constant 0 : index
    %108 = vector.load %arg9[%c0_38, %c0_39] : memref<8x16xbf16, #tpu.memory_space<vmem>>, vector<8x16xbf16>
    %109 = vector.extract_strided_slice %105 {offsets = [0, 0], sizes = [8, 1], strides = [1, 1]} : vector<8x5xf32> to vector<8x1xf32>
    %110 = vector.extract_strided_slice %105 {offsets = [0, 1], sizes = [8, 1], strides = [1, 1]} : vector<8x5xf32> to vector<8x1xf32>
    %111 = vector.extract_strided_slice %105 {offsets = [0, 2], sizes = [8, 1], strides = [1, 1]} : vector<8x5xf32> to vector<8x1xf32>
    %112 = vector.extract_strided_slice %105 {offsets = [0, 3], sizes = [8, 1], strides = [1, 1]} : vector<8x5xf32> to vector<8x1xf32>
    %113 = vector.extract_strided_slice %105 {offsets = [0, 4], sizes = [8, 1], strides = [1, 1]} : vector<8x5xf32> to vector<8x1xf32>
    %114 = vector.extract_strided_slice %106 {offsets = [0, 0], sizes = [16, 1], strides = [1, 1]} : vector<16x3xf32> to vector<16x1xf32>
    %115 = vector.extract_strided_slice %106 {offsets = [0, 1], sizes = [16, 1], strides = [1, 1]} : vector<16x3xf32> to vector<16x1xf32>
    %116 = vector.extract_strided_slice %106 {offsets = [0, 2], sizes = [16, 1], strides = [1, 1]} : vector<16x3xf32> to vector<16x1xf32>
    %cst_40 = arith.constant dense<0.000000e+00> : vector<32xf32>
    %117 = vector.multi_reduction <add>, %104, %cst_40 [0] : vector<8x32xf32> to vector<32xf32>
    %118 = vector.shape_cast %117 : vector<32xf32> to vector<1x32xf32>
    %cst_41 = arith.constant 8.000000e+00 : f32
    %119 = vector.broadcast %cst_41 : f32 to vector<1x32xf32>
    %120 = arith.divf %118, %119 : vector<1x32xf32>
    %121 = vector.broadcast %120 : vector<1x32xf32> to vector<8x32xf32>
    %122 = arith.subf %104, %121 : vector<8x32xf32>
    %123 = arith.mulf %122, %122 : vector<8x32xf32>
    %cst_42 = arith.constant dense<0.000000e+00> : vector<32xf32>
    %124 = vector.multi_reduction <add>, %123, %cst_42 [0] : vector<8x32xf32> to vector<32xf32>
    %125 = vector.shape_cast %124 : vector<32xf32> to vector<1x32xf32>
    %cst_43 = arith.constant 8.000000e+00 : f32
    %126 = vector.broadcast %cst_43 : f32 to vector<1x32xf32>
    %127 = arith.divf %125, %126 : vector<1x32xf32>
    %128 = vector.broadcast %120 : vector<1x32xf32> to vector<8x32xf32>
    %129 = arith.subf %104, %128 : vector<8x32xf32>
    %cst_44 = arith.constant 9.99999974E-6 : f32
    %130 = vector.broadcast %cst_44 : f32 to vector<1x32xf32>
    %131 = arith.addf %127, %130 : vector<1x32xf32>
    %132 = math.rsqrt %131 : vector<1x32xf32>
    %133 = vector.broadcast %132 : vector<1x32xf32> to vector<8x32xf32>
    %134 = arith.mulf %129, %133 : vector<8x32xf32>
    %135 = vector.broadcast %109 : vector<8x1xf32> to vector<8x32xf32>
    %136 = arith.mulf %134, %135 : vector<8x32xf32>
    %137 = vector.broadcast %110 : vector<8x1xf32> to vector<8x32xf32>
    %138 = arith.addf %136, %137 : vector<8x32xf32>
    %cst_45 = arith.constant dense<0.000000e+00> : vector<32xf32>
    %139 = vector.multi_reduction <add>, %138, %cst_45 [0] : vector<8x32xf32> to vector<32xf32>
    %140 = vector.shape_cast %139 : vector<32xf32> to vector<1x32xf32>
    %cst_46 = arith.constant 8.000000e+00 : f32
    %141 = vector.broadcast %cst_46 : f32 to vector<1x32xf32>
    %142 = arith.divf %140, %141 : vector<1x32xf32>
    %143 = vector.broadcast %142 : vector<1x32xf32> to vector<8x32xf32>
    %144 = arith.subf %138, %143 : vector<8x32xf32>
    %145 = arith.mulf %144, %144 : vector<8x32xf32>
    %cst_47 = arith.constant dense<0.000000e+00> : vector<32xf32>
    %146 = vector.multi_reduction <add>, %145, %cst_47 [0] : vector<8x32xf32> to vector<32xf32>
    %147 = vector.shape_cast %146 : vector<32xf32> to vector<1x32xf32>
    %cst_48 = arith.constant 8.000000e+00 : f32
    %148 = vector.broadcast %cst_48 : f32 to vector<1x32xf32>
    %149 = arith.divf %147, %148 : vector<1x32xf32>
    %150 = vector.broadcast %142 : vector<1x32xf32> to vector<8x32xf32>
    %151 = arith.subf %138, %150 : vector<8x32xf32>
    %cst_49 = arith.constant 9.99999974E-6 : f32
    %152 = vector.broadcast %cst_49 : f32 to vector<1x32xf32>
    %153 = arith.addf %149, %152 : vector<1x32xf32>
    %154 = math.rsqrt %153 : vector<1x32xf32>
    %155 = vector.broadcast %154 : vector<1x32xf32> to vector<8x32xf32>
    %156 = arith.mulf %151, %155 : vector<8x32xf32>
    %157 = vector.broadcast %111 : vector<8x1xf32> to vector<8x32xf32>
    %158 = arith.mulf %156, %157 : vector<8x32xf32>
    %159 = vector.broadcast %112 : vector<8x1xf32> to vector<8x32xf32>
    %160 = arith.addf %158, %159 : vector<8x32xf32>
    %161 = arith.truncf %160 : vector<8x32xf32> to vector<8x32xbf16>
    %cst_50 = arith.constant dense<0.000000e+00> : vector<16x32xf32>
    %162 = tpu.matmul %107, %161, %cst_50 {dimension_numbers = #tpu.dot_dimension_numbers<[1], [0], [0], [1], [0, 0, 1, 1], [], []>} : vector<16x8xbf16>, vector<8x32xbf16>, vector<16x32xf32> -> vector<16x32xf32>
    %163 = vector.broadcast %114 : vector<16x1xf32> to vector<16x32xf32>
    %164 = arith.addf %162, %163 : vector<16x32xf32>
    %cst_51 = arith.constant 5.000000e-01 : f32
    %165 = vector.broadcast %cst_51 : f32 to vector<16x32xf32>
    %166 = arith.mulf %165, %164 : vector<16x32xf32>
    %cst_52 = arith.constant 0.707106769 : f32
    %167 = vector.broadcast %cst_52 : f32 to vector<16x32xf32>
    %168 = arith.mulf %164, %167 : vector<16x32xf32>
    %169 = math.erf %168 : vector<16x32xf32>
    %cst_53 = arith.constant 1.000000e+00 : f32
    %170 = vector.broadcast %cst_53 : f32 to vector<16x32xf32>
    %171 = arith.addf %170, %169 : vector<16x32xf32>
    %172 = arith.mulf %166, %171 : vector<16x32xf32>
    %cst_54 = arith.constant dense<0.000000e+00> : vector<32xf32>
    %173 = vector.multi_reduction <add>, %172, %cst_54 [0] : vector<16x32xf32> to vector<32xf32>
    %174 = vector.shape_cast %173 : vector<32xf32> to vector<1x32xf32>
    %cst_55 = arith.constant 1.600000e+01 : f32
    %175 = vector.broadcast %cst_55 : f32 to vector<1x32xf32>
    %176 = arith.divf %174, %175 : vector<1x32xf32>
    %177 = vector.broadcast %176 : vector<1x32xf32> to vector<16x32xf32>
    %178 = arith.subf %172, %177 : vector<16x32xf32>
    %179 = arith.mulf %178, %178 : vector<16x32xf32>
    %cst_56 = arith.constant dense<0.000000e+00> : vector<32xf32>
    %180 = vector.multi_reduction <add>, %179, %cst_56 [0] : vector<16x32xf32> to vector<32xf32>
    %181 = vector.shape_cast %180 : vector<32xf32> to vector<1x32xf32>
    %cst_57 = arith.constant 1.600000e+01 : f32
    %182 = vector.broadcast %cst_57 : f32 to vector<1x32xf32>
    %183 = arith.divf %181, %182 : vector<1x32xf32>
    %184 = vector.broadcast %176 : vector<1x32xf32> to vector<16x32xf32>
    %185 = arith.subf %172, %184 : vector<16x32xf32>
    %cst_58 = arith.constant 9.99999974E-6 : f32
    %186 = vector.broadcast %cst_58 : f32 to vector<1x32xf32>
    %187 = arith.addf %183, %186 : vector<1x32xf32>
    %188 = math.rsqrt %187 : vector<1x32xf32>
    %189 = vector.broadcast %188 : vector<1x32xf32> to vector<16x32xf32>
    %190 = arith.mulf %185, %189 : vector<16x32xf32>
    %191 = vector.broadcast %115 : vector<16x1xf32> to vector<16x32xf32>
    %192 = arith.mulf %190, %191 : vector<16x32xf32>
    %193 = vector.broadcast %116 : vector<16x1xf32> to vector<16x32xf32>
    %194 = arith.addf %192, %193 : vector<16x32xf32>
    %195 = arith.truncf %194 : vector<16x32xf32> to vector<16x32xbf16>
    %cst_59 = arith.constant dense<0.000000e+00> : vector<8x32xf32>
    %196 = tpu.matmul %108, %195, %cst_59 {dimension_numbers = #tpu.dot_dimension_numbers<[1], [0], [0], [1], [0, 0, 1, 1], [], []>} : vector<8x16xbf16>, vector<16x32xbf16>, vector<8x32xf32> -> vector<8x32xf32>
    %197 = vector.broadcast %113 : vector<8x1xf32> to vector<8x32xf32>
    %198 = arith.addf %196, %197 : vector<8x32xf32>
    %199 = arith.addf %198, %138 : vector<8x32xf32>
    %cst_60 = arith.constant 5.000000e-01 : f32
    %200 = vector.broadcast %cst_60 : f32 to vector<8x32xf32>
    %201 = arith.mulf %200, %199 : vector<8x32xf32>
    %cst_61 = arith.constant 0.707106769 : f32
    %202 = vector.broadcast %cst_61 : f32 to vector<8x32xf32>
    %203 = arith.mulf %199, %202 : vector<8x32xf32>
    %204 = math.erf %203 : vector<8x32xf32>
    %cst_62 = arith.constant 1.000000e+00 : f32
    %205 = vector.broadcast %cst_62 : f32 to vector<8x32xf32>
    %206 = arith.addf %205, %204 : vector<8x32xf32>
    %207 = arith.mulf %201, %206 : vector<8x32xf32>
    %208 = arith.addf %207, %1 : vector<8x32xf32>
    %cst_63 = arith.constant 5.000000e-01 : f32
    %209 = vector.broadcast %cst_63 : f32 to vector<8x32xf32>
    %210 = arith.mulf %209, %208 : vector<8x32xf32>
    %cst_64 = arith.constant 0.707106769 : f32
    %211 = vector.broadcast %cst_64 : f32 to vector<8x32xf32>
    %212 = arith.mulf %208, %211 : vector<8x32xf32>
    %213 = math.erf %212 : vector<8x32xf32>
    %cst_65 = arith.constant 1.000000e+00 : f32
    %214 = vector.broadcast %cst_65 : f32 to vector<8x32xf32>
    %215 = arith.addf %214, %213 : vector<8x32xf32>
    %216 = arith.mulf %210, %215 : vector<8x32xf32>
    %c0_66 = arith.constant 0 : index
    %c0_67 = arith.constant 0 : index
    %c0_68 = arith.constant 0 : index
    %217 = vector.load %arg10[%c0_66, %c0_67, %c0_68] : memref<1x8x32xf32, #tpu.memory_space<vmem>>, vector<1x8x32xf32>
    %218 = vector.shape_cast %217 : vector<1x8x32xf32> to vector<8x32xf32>
    %219 = vector.shape_cast %216 : vector<8x32xf32> to vector<1x8x32xf32>
    tpu.vector_store %arg10[%c0_66, %c0_67, %c0_68], %219 {strides = array<i32>} : memref<1x8x32xf32, #tpu.memory_space<vmem>>, vector<1x8x32xf32>,
    return
  }
  func.func @transform_0(%arg0: i32) -> (i32, i32, i32) {
    %c0_i32 = arith.constant 0 : i32
    %c0_i32_0 = arith.constant 0 : i32
    %c0_i32_1 = arith.constant 0 : i32
    return %arg0, %c0_i32, %c0_i32_0 : i32, i32, i32
  }
  func.func @transform_1(%arg0: i32) -> (i32, i32) {
    %c0_i32 = arith.constant 0 : i32
    %c0_i32_0 = arith.constant 0 : i32
    %c0_i32_1 = arith.constant 0 : i32
    return %c0_i32, %c0_i32_0 : i32, i32
  }
  func.func @transform_2(%arg0: i32) -> (i32, i32) {
    %c0_i32 = arith.constant 0 : i32
    %c0_i32_0 = arith.constant 0 : i32
    %c0_i32_1 = arith.constant 0 : i32
    return %c0_i32, %c0_i32_0 : i32, i32
  }
  func.func @transform_3(%arg0: i32) -> (i32, i32) {
    %c0_i32 = arith.constant 0 : i32
    %c0_i32_0 = arith.constant 0 : i32
    %c0_i32_1 = arith.constant 0 : i32
    return %c0_i32, %c0_i32_0 : i32, i32
  }
  func.func @transform_4(%arg0: i32) -> (i32, i32) {
    %c0_i32 = arith.constant 0 : i32
    %c0_i32_0 = arith.constant 0 : i32
    %c0_i32_1 = arith.constant 0 : i32
    return %c0_i32, %c0_i32_0 : i32, i32
  }
  func.func @transform_5(%arg0: i32) -> (i32, i32) {
    %c0_i32 = arith.constant 0 : i32
    %c0_i32_0 = arith.constant 0 : i32
    %c0_i32_1 = arith.constant 0 : i32
    return %c0_i32, %c0_i32_0 : i32, i32
  }
  func.func @transform_6(%arg0: i32) -> (i32, i32) {
    %c0_i32 = arith.constant 0 : i32
    %c0_i32_0 = arith.constant 0 : i32
    %c0_i32_1 = arith.constant 0 : i32
    return %c0_i32, %c0_i32_0 : i32, i32
  }
  func.func @transform_7(%arg0: i32) -> (i32, i32) {
    %c0_i32 = arith.constant 0 : i32
    %c0_i32_0 = arith.constant 0 : i32
    %c0_i32_1 = arith.constant 0 : i32
    return %c0_i32, %c0_i32_0 : i32, i32
  }
  func.func @transform_8(%arg0: i32) -> (i32, i32) {
    %c0_i32 = arith.constant 0 : i32
    %c0_i32_0 = arith.constant 0 : i32
    %c0_i32_1 = arith.constant 0 : i32
    return %c0_i32, %c0_i32_0 : i32, i32
  }
  func.func @transform_9(%arg0: i32) -> (i32, i32, i32) {
    %c0_i32 = arith.constant 0 : i32
    %c0_i32_0 = arith.constant 0 : i32
    %c0_i32_1 = arith.constant 0 : i32
    return %arg0, %c0_i32, %c0_i32_0 : i32, i32, i32
  }
}

</mosaic_0001>

<bundles_post_ra>
// kernel: cms_encoder.1
= control target key start
LH: loop header
LB: loop body
LE: loop exit
PB: predicated region body
PF: predicated region fallthrough
CT: control target
= control target key end

     0   :  { %14 = vsyncpa [#allocation3], 0  ;;  %s1379_s0 = inlined_call_operand.vmem [shape: f32[2,8,32], index: 0, kind: input, shape index: {}]   ;;  %s1380_s1 = inlined_call_operand.vmem [shape: f32[5,32], index: 1, kind: input, shape index: {}]   ;;  %s1381_s2 = inlined_call_operand.vmem [shape: f32[3,64], index: 2, kind: input, shape index: {}]   ;;  %s1382_s3 = inlined_call_operand.vmem [shape: bf16[32,64], index: 3, kind: input, shape index: {}]   ;;  %s1383_s4 = inlined_call_operand.vmem [shape: bf16[64,32], index: 4, kind: input, shape index: {}]   ;;  %s1384_s5 = inlined_call_operand.vmem [shape: f32[8,5], index: 5, kind: input, shape index: {}]   ;;  %s1385_s6 = inlined_call_operand.vmem [shape: f32[16,3], index: 6, kind: input, shape index: {}]   ;;  %s1386_s7 = inlined_call_operand.vmem [shape: bf16[16,8], index: 7, kind: input, shape index: {}]   ;;  %s1387_s8 = inlined_call_operand.vmem [shape: bf16[8,16], index: 8, kind: input, shape index: {}]   ;;  %s1388_s9 = inlined_call_operand.hbm [shape: f32[2,8,32], index: 9, kind: output, shape index: {}]  }
   0x1   :  { %16 = vsyncpa [#allocation3 + $0x1], 0  ;;  %s1163_s30 = smov 0   ;;  %s1165_s10 = smov 0  }
   0x2   :  { %s1167_s11 = smov 0   ;;  %s1169_s12 = smov 0  }
   0x3 LB: > { %s1184_s13 = sadd.s32 4294967295, %s1103_s12   ;;  %s889_s14 = sadd.s32 4294967294, %s1103_s12   ;;  %s1103_s12 = sphi %s1169_s12, %s1394_s12   ;;  %s1099_s11 = sphi %s1167_s11, %s1393_s11   ;;  %s1095_s10 = sphi %s1165_s10, %s1392_s10   ;;  %s1091_s30 = sphi %s1163_s30, %s1391_s30  }
   0x4   : > { %s1188_s15 = sadd.s32 1, %s1103_s12   ;;  %s223_s16 = sadd.s32 1, %s1099_s11 }
   0x5   : > { %s220_s17 = ssub.s32 %s1103_s12, %s1188_s15  ;;  %p233_p0 = scmp.ne.s32.totalorder %s1099_s11, %s1095_s10 }
   0x6   : > { %p221_p1 = scmp.eq.s32.totalorder %s220_s17, 0  ;;  %p234_p2 = scmp.eq.s32.totalorder %s1184_s13, 1 }
   0x7   : > { %p239_p3 = scmp.ne.s32.totalorder %s1095_s10, %s1091_s30  ;;  %p240_p4 = scmp.eq.s32.totalorder %s889_s14, 1 }
   0x8   : > { %s1199_s18 = scalar_select %p221_p1, %s1099_s11, %s223_s16  }
   0x9   : > { %p1201_p5 = por %p234_p2, %p233_p0  ;;  %p1205_p6 = por %p240_p4, %p239_p3 }
   0xa   : > { %p892_p7 = scmp.ge.s32.totalorder %s1103_s12, 1  ;;  %p289_p8 = scmp.lt.s32.totalorder %s1103_s12, 3 }
   0xc   : > { %p290_p9 = pnand %p892_p7, %p289_p8 }
   0xd   : > { %p324_p10 = scmp.lt.s32.totalorder (!%p290_p9), %s1184_s13, 1  ;;  %vm344_vm0 = vcmask (!%p290_p9), 261120   ;;  %v359_v9 = vlaneseq (!%p290_p9)  ;;  %v1228_v13 = vld [vmem:[%s1380_s1] sm:$0x1f] (!%p290_p9)  ;;  %v1105_v28 = vmov (!%p290_p9), 0.0   ;;  %vm1106_vm1 = vmmov (!%p290_p9), 0  }
   0xe   : > { %293 = sbr.rel (%p290_p9) target bundleno = 2106 (0x83a), region = 56  ;;  %v1010_v27 = vld [vmem:[%s1382_s3] sm:$0xff] (!%p290_p9)   ;;  %922 = vmatprep.subr.bf16.mxu0 (!%p290_p9), %v1105_v28  ;;  %926 = vmatprep.mubr.msk.bf16.mxu0 (!%p290_p9), %vm1106_vm1, %v1105_v28  ;;  %v1011_v29 = vld [vmem:[%s1382_s3 + $0x8] sm:$0xff] (!%p290_p9)   ;;  %vm457_vm2 = vcmask (!%p290_p9), 523264   ;;  %v1014_v62 = vld [vmem:[%s1383_s4 + $0x10] sm:$0xff] (!%p290_p9)   ;;  %vm650_vm3 = vcmask (!%p290_p9), 1043456  }
   0xf   : > { %v1222_v11 = vshrl.u32 (!%p290_p9), %v359_v9, 7  ;;  %923 = vmatpush3.bf16.msra.mxu0 (!%p290_p9), %v1010_v27  ;;  %930 = vmatprep.subr.bf16.mxu1 (!%p290_p9), %v1105_v28  ;;  %v331_v42 = vld [vmem:[%s1381_s2] sm:$0x7] (!%p290_p9)  ;;  %v1013_v61 = vld [vmem:[%s1383_s4 + $0x8] sm:$0xff] (!%p290_p9)   ;;  %v1015_v63 = vld [vmem:[%s1383_s4 + $0x18] sm:$0xff] (!%p290_p9)   ;;  %vm646_vm4 = vcmask (!%p290_p9), 64512  }
  0x10   : > { %924 = vmatprep.subr.bf16.mxu0 (!%p290_p9), %v1105_v28  ;;  %938 = vmatprep.mubr.msk.bf16.mxu1 (!%p290_p9), %vm1106_vm1, %v1105_v28  ;;  %v1012_v60 = vld [vmem:[%s1383_s4] sm:$0xff] (!%p290_p9)   ;;  %vm759_vm5 = vcmask (!%p290_p9), 130048   ;;  %s321_s28 = sand.u32 (!%p290_p9), 1, %s1095_s10   ;;  %s907_s14 = sshll.u32 (!%p290_p9), %s1184_s13, 7 }
  0x11   : > { %v361_v12 = vsub.s32 (!%p290_p9), 0, %v1222_v11  ;;  %v366_v14 = vsub.s32 (!%p290_p9), 1, %v1222_v11  ;;  %v384_v33 = vsub.s32 (!%p290_p9), 2, %v1222_v11  ;;  %v389_v34 = vsub.s32 (!%p290_p9), 3, %v1222_v11  ;;  %931 = vmatpush3.bf16.msra.mxu1 (!%p290_p9), %v1012_v60  ;;  %s893_s29 = sshll.u32 (!%p290_p9), %s321_s28, 3  ;;  %s1336_s23 = scalar_lea.hbm (!%p290_p9), %s1388_s9, %s907_s14 }
  0x12   : > { %932 = vmatprep.subr.bf16.mxu1 (!%p290_p9), %v1105_v28  ;;  %s323_s16 = scalar_lea.vmem (!%p290_p9), [#allocation2], %s893_s29  ;;  %s817_s24 = scalar_lea.sflag (!%p290_p9), [#allocation3], %s321_s28 }
  0x13   : > { %v362_v15 = vrot.slane (!%p290_p9), %v1228_v13, %v361_v12  ;;  %v367_v18 = vrot.slane (!%p290_p9), %v1228_v13, %v366_v14  ;;  %925 = vmatpush3.bf16.msra.mxu0 (!%p290_p9), %v1011_v29  ;;  %v385_v35 = vrot.slane (!%p290_p9), %v1228_v13, %v384_v33  ;;  %v390_v38 = vrot.slane (!%p290_p9), %v1228_v13, %v389_v34  ;;  %v561_v29 = vld [vmem:[%s1385_s6] sm:$0xff] (!%p290_p9)  ;;  %s830_s17 = sshll.u32 (!%p290_p9), %s323_s16, 4  ;;  %s1338_s17 = int_to_ptr.vmem [resolvable:$true] %s830_s17 }
  0x14   : > { %942 = vmatprep.subr.bf16.mxu0 (!%p290_p9), %v1105_v28  ;;  %v396_v43 = vrot.slane (!%p290_p9), %v331_v42, %v361_v12  ;;  %v475_v9 = vrot.slane (!%p290_p9), %v331_v42, %v366_v14  ;;  %v480_v12 = vrot.slane (!%p290_p9), %v331_v42, %v384_v33 }
  0x15   : > { %s325_s21 = scalar_select %p324_p10, %s1184_s13, 1  ;;  %933 = vmatpush3.bf16.msra.mxu1 %v1013_v61 }
  0x16   : > { %934 = vmatprep.subr.bf16.mxu1 %v1105_v28  ;;  %s1112_s13 = smov [#allocation2]  }
  0x17   : > { %s894_s22 = sshll.u32 %s325_s21, 3  ;;  %s1045_s26 = sshll.u32 %s1112_s13, 4  ;;  %s1046_s26 = int_to_ptr.vmem [resolvable:$false] %s1045_s26 }
  0x18   : > { %s327_s25 = scalar_lea.vmem %s1379_s0, %s894_s22  ;;  %s1047_s27 = scalar_lea.vmem %s1046_s26, 256 }
  0x19   : > { %v1216_v0 = vld [vmem:[%s327_s25] sm:$0xff]  ;;  %935 = vmatpush3.bf16.msra.mxu1 %v1014_v62  ;;  %s1041_s25 = scalar_lea.vmem %s1338_s17, 128  ;;  %p1048_p0 = scmp.lt.s32.totalorder %s1338_s17, %s1046_s26 }
  0x1a   : > { %v345_v1 = vsel %vm344_vm0, %v1216_v0, 0.0  ;;  %936 = vmatprep.subr.bf16.mxu1 %v1105_v28  ;;  %p1042_p11 = scmp.ne.s32.totalorder %s1338_s17, %s1041_s25  ;;  %p1049_p1 = scmp.lt.s32.totalorder %s1047_s27, %s1041_s25 }
  0x1b   : > { %346 = vadd.xlane.f32.xlu0 %v345_v1  ;;  %v1287_v1 = vld [vmem:[%s1384_s5] sm:$0xff] }
  0x1c   : > { %p1043_p12 = pnand %p1042_p11, %p1201_p5  ;;  %p1050_p2 = por %p1049_p1, %p1048_p0 }
  0x1d   : > { %937 = vmatpush3.bf16.msra.mxu1 %v1015_v63 }
  0x1e   : > { %p1044_p13 = pneg %p1043_p12 }
  0x20   : > { %p1051_p3 = pnand %p1050_p2, %p1044_p13 }
  0xa8   : > { %v347_v2 = vpop.xlane.xlu0 %346 }
  0xa9   : > { %v349_v3 = vmul.f32 0.03125, %v347_v2  ;;  %v1107_v2 = vmov 0  }
  0xaa   : > { %1000 = vset.pattern.permute.xlu0 %v1107_v2 }
  0xab   : > { %v350_v4 = vsub.f32 %v1216_v0, %v349_v3  ;;  %v1108_v3 = vmov 1  }
  0xac   : > { %1001 = vset.pattern.permute.xlu1 %v1108_v3 }
  0xad   : > { %v351_v5 = vmul.f32 %v350_v4, %v350_v4 }
  0xaf   : > { %v352_v6 = vsel %vm344_vm0, %v351_v5, 0.0  ;;  %v1110_v5 = vmov 3  }
  0xb0   : > { %353 = vadd.xlane.f32.xlu0 %v352_v6 }
 0x13d   : > { %v354_v7 = vpop.xlane.xlu0 %353 }
 0x13e   : > { %v355_v8 = vmul.f32 0.03125, %v354_v7 }
 0x140   : > { %v356_v10 = vadd.f32 1e-05, %v355_v8 }
 0x142   : > { %1017 = vrsqrt.f32 %v356_v10 }
 0x14c   : > { %v1018_v16 = vpop.eup %1017 }
 0x14d   : > { %v358_v17 = vmul.f32 %v1018_v16, %v350_v4  ;;  %v1109_v4 = vmov 2  }
 0x14f   : > { %v363_v19 = vmul.f32 %v362_v15, %v358_v17 }
 0x151   : > { %v1235_v20 = vadd.f32 %v367_v18, %v363_v19  ;;  %v485_v19 = vsub.s32 4, %v1222_v11 }
 0x153   : > { %v369_v21 = vsel %vm344_vm0, %v1235_v20, 0.0 }
 0x154   : > { %370 = vadd.xlane.f32.xlu1 %v369_v21  ;;  %v486_v21 = vrot.slane %v1228_v13, %v485_v19 }
 0x1e1   : > { %v371_v22 = vpop.xlane.xlu1 %370 }
 0x1e2   : > { %v372_v23 = vmul.f32 0.03125, %v371_v22 }
 0x1e4   : > { %v373_v24 = vsub.f32 %v1235_v20, %v372_v23 }
 0x1e6   : > { %v374_v25 = vmul.f32 %v373_v24, %v373_v24 }
 0x1e8   : > { %v375_v26 = vsel %vm344_vm0, %v374_v25, 0.0 }
 0x1e9   : > { %376 = vadd.xlane.f32.xlu1 %v375_v26 }
 0x276   : > { %v377_v30 = vpop.xlane.xlu1 %376 }
 0x277   : > { %v378_v31 = vmul.f32 0.03125, %v377_v30  ;;  %v562_v30 = vld [vmem:[%s1385_s6 + $0x8] sm:$0xff] }
 0x279   : > { %v379_v32 = vadd.f32 1e-05, %v378_v31 }
 0x27b   : > { %1019 = vrsqrt.f32 %v379_v32 }
 0x285   : > { %v1020_v36 = vpop.eup %1019 }
 0x286   : > { %v381_v37 = vmul.f32 %v1020_v36, %v373_v24 }
 0x288   : > { %v386_v39 = vmul.f32 %v385_v35, %v381_v37 }
 0x28a   : > { %v391_v40 = vadd.f32 %v390_v38, %v386_v39 }
 0x28c   : > { %v392_v41 = vpack.c.bf16 %v391_v40, %v391_v40 }
 0x28e   : > { %927 = vmatmul.mubr.msk.bf16.vlgmr.msra.gmra.mrb[0].mxu0 %vm344_vm0, %v392_v41 }
 0x28f   : > { %944 = vmatprep.mubr.msk.bf16.mxu0 %vm1106_vm1, %v1105_v28 }
 0x361   : > { %v446_v44 = vpop.f32.mrb[0].mxu0 }
 0x362   : > { %v447_v45 = vadd.f32 %v446_v44, %v396_v43  ;;  %v928_v46 = vpop.f32.mrb[1].mxu0 }
 0x363   : > { %v449_v47 = vpop.f32.mrb[2].mxu0 }
 0x364   : > { %v453_v48 = vmul.f32 0.70710677, %v447_v45  ;;  %v929_v49 = vpop.f32.mrb[3].mxu0  ;;  %v452_v51 = vmul.f32 0.5, %v447_v45 }
 0x366   : > { %1021 = verf.f32 %v453_v48 }
 0x370   : > { %v1022_v50 = vpop.eup %1021 }
 0x371   : > { %v455_v52 = vadd.f32 1.0, %v1022_v50 }
 0x373   : > { %v456_v53 = vmul.f32 %v455_v52, %v452_v51 }
 0x375   : > { %v458_v54 = vsel %vm457_vm2, %v456_v53, 0.0 }
 0x376   : > { %459 = vadd.xlane.f32.xlu0 %v458_v54 }
 0x38c   : > { %590 = vperm.xlu0 %1000, %v1287_v1  }
 0x390   : > { %1007 = vset.pattern.permute.xlu0 %v1109_v4 }
 0x391   : > { %749 = vperm.xlu0 %1007, %v562_v30  }
 0x403   : > { %v460_v55 = vpop.xlane.xlu0 %459 }
 0x404   : > { %v462_v56 = vmul.f32 0.015625, %v460_v55 }
 0x406   : > { %v463_v57 = vsub.f32 %v456_v53, %v462_v56 }
 0x408   : > { %v464_v58 = vmul.f32 %v463_v57, %v463_v57 }
 0x40a   : > { %v465_v59 = vsel %vm457_vm2, %v464_v58, 0.0 }
 0x40b   : > { %466 = vadd.xlane.f32.xlu1 %v465_v59  ;;  %v591_v52 = vpop.permute.xlu0 %590 }
 0x41c   : > { %595 = vperm.xlu1 %1001, %v1287_v1  }
 0x420   : > { %1002 = vset.pattern.permute.xlu1 %v1109_v4 }
 0x421   : > { %621 = vperm.xlu1 %1002, %v1287_v1  }
 0x425   : > { %1003 = vset.pattern.permute.xlu1 %v1110_v5 }
 0x426   : > { %626 = vperm.xlu1 %1003, %v1287_v1  }
 0x42a   : > { %1004 = vset.pattern.permute.xlu1 %v1107_v2 }
 0x42b   : > { %633 = vperm.xlu1 %1004, %v561_v29  }
 0x42f   : > { %638 = vperm.xlu1 %1004, %v562_v30  }
 0x433   : > { %1005 = vset.pattern.permute.xlu1 %v1108_v3 }
 0x434   : > { %735 = vperm.xlu1 %1005, %v561_v29  }
 0x438   : > { %739 = vperm.xlu1 %1005, %v562_v30  }
 0x43c   : > { %1006 = vset.pattern.permute.xlu1 %v1109_v4 }
 0x43d   : > { %745 = vperm.xlu1 %1006, %v561_v29  }
 0x498   : > { %v467_v6 = vpop.xlane.xlu1 %466 }
 0x499   : > { %v468_v7 = vmul.f32 0.015625, %v467_v6 }
 0x49b   : > { %v469_v8 = vadd.f32 1e-05, %v468_v7 }
 0x49c   : > { %v596_v54 = vpop.permute.xlu1 %595 }
 0x49d   : > { %1023 = vrsqrt.f32 %v469_v8 }
 0x4a7   : > { %v1024_v10 = vpop.eup %1023 }
 0x4a8   : > { %v471_v15 = vmul.f32 %v1024_v10, %v463_v57 }
 0x4aa   : > { %v476_v16 = vmul.f32 %v475_v9, %v471_v15 }
 0x4ac   : > { %v481_v17 = vadd.f32 %v480_v12, %v476_v16 }
 0x4ae   : > { %v482_v18 = vpack.c.bf16 %v481_v17, %v481_v17  ;;  %v622_v17 = vpop.permute.xlu1 %621 }
 0x4b0   : > { %939 = vmatmul.mubr.msk.bf16.vlgmr.msra.gmra.mrb[0].mxu1 %vm457_vm2, %v482_v18 }
 0x583   : > { %v548_v22 = vpop.f32.mrb[0].mxu1 }
 0x584   : > { %v549_v23 = vadd.f32 %v548_v22, %v486_v21  ;;  %v940_v24 = vpop.f32.mrb[1].mxu1  ;;  %v627_v21 = vpop.permute.xlu1 %626 }
 0x585   : > { %v551_v25 = vpop.f32.mrb[2].mxu1 }
 0x586   : > { %v554_v14 = vadd.f32 %v549_v23, %v1235_v20  ;;  %v941_v26 = vpop.f32.mrb[3].mxu1 }
 0x587   : > { %v1111_v26 = vmov 4  }
 0x588   : > { %v556_v27 = vmul.f32 0.70710677, %v554_v14  ;;  %v555_v13 = vmul.f32 0.5, %v554_v14  ;;  %v1016_v14 = vld [vmem:[%s1386_s7] sm:$0xff]   ;;  %1008 = vset.pattern.permute.xlu1 %v1111_v26  ;;  %1009 = vset.pattern.permute.xlu0 %v1111_v26 }
 0x589   : > { %756 = vperm.xlu1 %1008, %v1287_v1  }
 0x58a   : > { %1025 = verf.f32 %v556_v27  ;;  %v634_v27 = vpop.permute.xlu1 %633 }
 0x594   : > { %v1026_v11 = vpop.eup %1025 }
 0x595   : > { %v558_v31 = vadd.f32 1.0, %v1026_v11 }
 0x597   : > { %v559_v20 = vmul.f32 %v558_v31, %v555_v13  ;;  %v639_v13 = vpop.permute.xlu1 %638 }
 0x599   : > { %v566_v32 = vsel %vm344_vm0, %v559_v20, 0.0 }
 0x59a   : > { %v567_v33 = vrot.slane %v566_v32, 4 }
 0x59c   : > { %v568_v34 = vadd.f32 %v567_v33, %v566_v32 }
 0x59e   : > { %v569_v35 = vrot.slane %v568_v34, 2 }
 0x5a0   : > { %v570_v36 = vadd.f32 %v569_v35, %v568_v34 }
 0x5a2   : > { %v571_v37 = vrot.slane %v570_v36, 1 }
 0x5a4   : > { %v572_v38 = vadd.f32 %v571_v37, %v570_v36 }
 0x5a6   : > { %v574_v39 = vmul.f32 0.125, %v572_v38 }
 0x5a8   : > { %v575_v40 = vsub.f32 %v559_v20, %v574_v39 }
 0x5aa   : > { %v576_v41 = vmul.f32 %v575_v40, %v575_v40 }
 0x5ac   : > { %v577_v42 = vsel %vm344_vm0, %v576_v41, 0.0 }
 0x5ad   : > { %v578_v43 = vrot.slane %v577_v42, 4 }
 0x5af   : > { %v579_v44 = vadd.f32 %v578_v43, %v577_v42 }
 0x5b1   : > { %v580_v45 = vrot.slane %v579_v44, 2 }
 0x5b3   : > { %v581_v46 = vadd.f32 %v580_v45, %v579_v44 }
 0x5b5   : > { %v582_v47 = vrot.slane %v581_v46, 1 }
 0x5b7   : > { %v583_v48 = vadd.f32 %v582_v47, %v581_v46 }
 0x5b9   : > { %v584_v49 = vmul.f32 0.125, %v583_v48 }
 0x5bb   : > { %v585_v50 = vadd.f32 1e-05, %v584_v49 }
 0x5bd   : > { %1027 = vrsqrt.f32 %v585_v50 }
 0x5c7   : > { %v1028_v51 = vpop.eup %1027 }
 0x5c8   : > { %v587_v53 = vmul.f32 %v1028_v51, %v575_v40 }
 0x5ca   : > { %v593_v55 = vmul.f32 %v591_v52, %v587_v53 }
 0x5cc   : > { %v1309_v56 = vadd.f32 %v596_v54, %v593_v55 }
 0x5ce   : > { %v599_v57 = vsel %vm344_vm0, %v1309_v56, 0.0 }
 0x5cf   : > { %v600_v58 = vrot.slane %v599_v57, 4 }
 0x5d1   : > { %v601_v59 = vadd.f32 %v600_v58, %v599_v57 }
 0x5d3   : > { %v602_v60 = vrot.slane %v601_v59, 2 }
 0x5d5   : > { %v603_v61 = vadd.f32 %v602_v60, %v601_v59 }
 0x5d7   : > { %v604_v62 = vrot.slane %v603_v61, 1 }
 0x5d9   : > { %v605_v63 = vadd.f32 %v604_v62, %v603_v61 }
 0x5db   : > { %v606_v2 = vmul.f32 0.125, %v605_v63 }
 0x5dd   : > { %v607_v3 = vsub.f32 %v1309_v56, %v606_v2 }
 0x5df   : > { %v608_v4 = vmul.f32 %v607_v3, %v607_v3 }
 0x5e1   : > { %v609_v5 = vsel %vm344_vm0, %v608_v4, 0.0 }
 0x5e2   : > { %v610_v6 = vrot.slane %v609_v5, 4 }
 0x5e4   : > { %v611_v7 = vadd.f32 %v610_v6, %v609_v5  ;;  %v736_v5 = vpop.permute.xlu1 %735 }
 0x5e6   : > { %v612_v8 = vrot.slane %v611_v7, 2 }
 0x5e8   : > { %v613_v9 = vadd.f32 %v612_v8, %v611_v7  ;;  %v740_v6 = vpop.permute.xlu1 %739 }
 0x5ea   : > { %v614_v10 = vrot.slane %v613_v9, 1 }
 0x5ec   : > { %v615_v12 = vadd.f32 %v614_v10, %v613_v9  ;;  %v746_v10 = vpop.permute.xlu1 %745 }
 0x5ee   : > { %v616_v15 = vmul.f32 0.125, %v615_v12  ;;  %v750_v12 = vpop.permute.xlu0 %749 }
 0x5f0   : > { %v617_v16 = vadd.f32 1e-05, %v616_v15 }
 0x5f2   : > { %1029 = vrsqrt.f32 %v617_v16 }
 0x5fc   : > { %v1030_v18 = vpop.eup %1029 }
 0x5fd   : > { %v619_v19 = vmul.f32 %v1030_v18, %v607_v3 }
 0x5ff   : > { %v624_v22 = vmul.f32 %v622_v17, %v619_v19 }
 0x601   : > { %v629_v23 = vadd.f32 %v627_v21, %v624_v22  ;;  %v565_v21 = vld [vmem:[%s1387_s8] sm:$0xf] }
 0x603   : > { %v630_v24 = vpack.c.bf16 %v629_v23, %v629_v23 }
 0x605   : > { %v652_v25 = vsel %vm650_vm3, %v630_v24, 0 }
 0x606   : > { %943 = vmatpush3.bf16.msra.mxu0 %v652_v25 }
 0x607   : > { %948 = vmatprep.subr.bf16.mxu0 %v1105_v28 }
 0x608   : > { %v757_v22 = vpop.permute.xlu1 %756 }
 0x609   : > { %945 = vmatmul.mubr.msk.bf16.vlgmr.msra.gmra.mrb[4].mxu0 %vm646_vm4, %v1016_v14 }
 0x60a   : > { %950 = vmatprep.mubr.msk.bf16.mxu0 %vm1106_vm1, %v1105_v28 }
 0x6dc   : > { %v688_v29 = vpop.f32.mrb[4].mxu0 }
 0x6dd   : > { %v689_v30 = vadd.f32 %v688_v29, %v634_v27  ;;  %v946_v11 = vpop.f32.mrb[5].mxu0 }
 0x6de   : > { %v691_v31 = vpop.f32.mrb[6].mxu0 }
 0x6df   : > { %v697_v20 = vmul.f32 0.70710677, %v689_v30  ;;  %v692_v32 = vadd.f32 %v691_v31, %v639_v13  ;;  %v947_v33 = vpop.f32.mrb[7].mxu0  ;;  %v695_v36 = vmul.f32 0.5, %v689_v30 }
 0x6e1   : > { %1031 = verf.f32 %v697_v20  ;;  %v698_v34 = vmul.f32 0.70710677, %v692_v32  ;;  %v696_v39 = vmul.f32 0.5, %v692_v32 }
 0x6e3   : > { %1033 = verf.f32 %v698_v34 }
 0x6eb   : > { %v1032_v35 = vpop.eup %1031 }
 0x6ec   : > { %v701_v28 = vadd.f32 1.0, %v1032_v35 }
 0x6ed   : > { %v1034_v37 = vpop.eup %1033 }
 0x6ee   : > { %v703_v38 = vmul.f32 %v701_v28, %v695_v36  ;;  %v702_v40 = vadd.f32 1.0, %v1034_v37 }
 0x6f0   : > { %v704_v1 = vmul.f32 %v702_v40, %v696_v39  ;;  %v705_v41 = vsel %vm344_vm0, %v703_v38, 0.0 }
 0x6f2   : > { %v706_v42 = vsel %vm344_vm0, %v704_v1, 0.0 }
 0x6f3   : > { %v707_v43 = vadd.f32 %v706_v42, %v705_v41 }
 0x6f5   : > { %v708_v44 = vrot.slane %v707_v43, 4 }
 0x6f7   : > { %v709_v45 = vadd.f32 %v708_v44, %v707_v43 }
 0x6f9   : > { %v710_v46 = vrot.slane %v709_v45, 2 }
 0x6fb   : > { %v711_v47 = vadd.f32 %v710_v46, %v709_v45 }
 0x6fd   : > { %v712_v48 = vrot.slane %v711_v47, 1 }
 0x6ff   : > { %v713_v49 = vadd.f32 %v712_v48, %v711_v47 }
 0x701   : > { %v715_v50 = vmul.f32 0.0625, %v713_v49 }
 0x703   : > { %v717_v51 = vsub.f32 %v704_v1, %v715_v50  ;;  %v716_v52 = vsub.f32 %v703_v38, %v715_v50 }
 0x705   : > { %v719_v53 = vmul.f32 %v717_v51, %v717_v51  ;;  %v718_v54 = vmul.f32 %v716_v52, %v716_v52 }
 0x707   : > { %v720_v55 = vsel %vm344_vm0, %v718_v54, 0.0  ;;  %v721_v57 = vsel %vm344_vm0, %v719_v53, 0.0 }
 0x708   : > { %v722_v58 = vadd.f32 %v721_v57, %v720_v55 }
 0x70a   : > { %v723_v59 = vrot.slane %v722_v58, 4 }
 0x70c   : > { %v724_v60 = vadd.f32 %v723_v59, %v722_v58 }
 0x70e   : > { %v725_v61 = vrot.slane %v724_v60, 2 }
 0x710   : > { %v726_v62 = vadd.f32 %v725_v61, %v724_v60 }
 0x712   : > { %v727_v63 = vrot.slane %v726_v62, 1 }
 0x714   : > { %v728_v2 = vadd.f32 %v727_v63, %v726_v62 }
 0x716   : > { %v729_v3 = vmul.f32 0.0625, %v728_v2 }
 0x718   : > { %v730_v4 = vadd.f32 1e-05, %v729_v3 }
 0x71a   : > { %1035 = vrsqrt.f32 %v730_v4 }
 0x724   : > { %v1036_v7 = vpop.eup %1035 }
 0x725   : > { %v732_v8 = vmul.f32 %v1036_v7, %v716_v52  ;;  %v733_v9 = vmul.f32 %v1036_v7, %v717_v51 }
 0x727   : > { %v742_v15 = vmul.f32 %v736_v5, %v732_v8  ;;  %v743_v16 = vmul.f32 %v740_v6, %v733_v9 }
 0x729   : > { %v752_v17 = vadd.f32 %v746_v10, %v742_v15  ;;  %v753_v18 = vadd.f32 %v750_v12, %v743_v16 }
 0x72b   : > { %v754_v19 = vpack.c.bf16 %v753_v18, %v752_v17 }
 0x72d   : > { %949 = vmatpush3.bf16.msra.mxu0 %v754_v19 }
 0x730   : > { %951 = vmatmul.mubr.msk.bf16.vlgmr.msra.gmra.mrb[8].mxu0 %vm759_vm5, %v565_v21 }
 0x803   : > { %v797_v23 = vpop.f32.mrb[8].mxu0 }
 0x804   : > { %v798_v24 = vadd.f32 %v797_v23, %v757_v22  ;;  %v952_v25 = vpop.f32.mrb[9].mxu0 }
 0x805   : > { %v800_v14 = vpop.f32.mrb[10].mxu0 }
 0x806   : > { %v803_v26 = vadd.f32 %v798_v24, %v1309_v56  ;;  %v953_v27 = vpop.f32.mrb[11].mxu0 }
 0x808   : > { %v805_v29 = vmul.f32 0.70710677, %v803_v26  ;;  %v804_v11 = vmul.f32 0.5, %v803_v26 }
 0x80a   : > { %1037 = verf.f32 %v805_v29 }
 0x814   : > { %v1038_v30 = vpop.eup %1037 }
 0x815   : > { %v807_v13 = vadd.f32 1.0, %v1038_v30 }
 0x817   : > { %v808_v31 = vmul.f32 %v807_v13, %v804_v11 }
 0x819   : > { %v809_v20 = vadd.f32 %v808_v31, %v1216_v0 }
 0x81b   : > { %v811_v32 = vmul.f32 0.70710677, %v809_v20  ;;  %v810_v34 = vmul.f32 0.5, %v809_v20 }
 0x81d   : > { %1039 = verf.f32 %v811_v32 }
 0x827   : > { %v1040_v33 = vpop.eup %1039 }
 0x828   : > { %v813_v56 = vadd.f32 1.0, %v1040_v33 }
 0x82a   : > { %v814_v35 = vmul.f32 %v813_v56, %v810_v34 }
 0x82c   : > { %815 = vst.msk [vmem:[%s323_s16] sm:$0xff] %vm344_vm0, %v814_v35 }
 0x82d   : > { %1054 = shalt.err (!%p1051_p3)
}
 0x82e   : > { %s1055_s28 = scalar_lea.hbm %s1336_s23, 128  ;;  %s1059_s16 = scalar_lea.hbm %s1388_s9, 256 }
 0x82f   : > { %p1056_p4 = scmp.ne.s32.totalorder %s1336_s23, %s1055_s28  ;;  %p1060_p9 = scmp.lt.u32.totalorder %s1336_s23, %s1388_s9 }
 0x830   : > { %p1061_p10 = scmp.lt.u32.totalorder %s1059_s16, %s1055_s28  ;;  %p1063_p12 = scmp.lt.u32.totalorder %s1055_s28, %s1336_s23 }
 0x831   : > { %p1057_p7 = pnand %p1056_p4, %p1201_p5 }
 0x832   : > { %p1062_p11 = por %p1061_p10, %p1060_p9 }
 0x833   : > { %p1058_p8 = pneg %p1057_p7 }
 0x834   : > { %p1064_p13 = por %p1063_p12, %p1062_p11 }
 0x836   : > { %p1065_p0 = pnand %p1064_p13, %p1058_p8 }
 0x838   : > { %1068 = shalt.err (!%p1065_p0)
}
 0x839   : > { %954 = dma.vmem_to_hbm [thread:$0]  (%p1201_p5), %s1338_s17, 128, %s1336_s23, %s817_s24  }
 0x83a PF: > { %p960_p1 = scmp.ge.s32.totalorder %s1103_s12, 2  ;;  %s842_s25 = sand.u32 1, %s1091_s30  }
 0x83b   : > { %s843_s13 = scalar_lea.sflag [#allocation3], %s842_s25 }
 0x83c   : > { %p957_p2 = pnand %p960_p1, %p1205_p6 }
 0x83e   : > { %1086 = dma.done.wait (!%p957_p2), %s843_s13, 128  }
 0x83f   : > { %1088 = vsyncadd (!%p957_p2), %s843_s13, 4294967168  ;;  %p19_p3 = scmp.ge.s32.totalorder %s1188_s15, 4   ;;  %s1391_s30 = smov %s1095_s10 }
 0x840   : > { %s1392_s10 = smov %s1099_s11  ;;  %s1393_s11 = smov %s1199_s18 }
 0x841   : > { %s1394_s12 = smov %s1188_s15  ;;  %21 = sbr.rel (!%p19_p3) target bundleno = 3 (0x3), region = 91 }
 0x848   :  { %848 = vsyncpa [#allocation3], 1 }
 0x849   :  { %850 = vsyncpa [#allocation3 + $0x1], 1 }

</bundles_post_ra>
